<compile_context>
chip_gen: v5e
topology: v5e:2x2
jax: 0.10.0
libtpu: 0.0.40
codegen_flags: <defaults>
</compile_context>

<pallas_src>
import functools
import math

import jax
import jax.numpy as jnp
from jax import lax
from jax.experimental import pallas as pl
from jax.experimental.pallas import tpu as pltpu


def _round_up(x: int, m: int) -> int:
    return ((x + m - 1) // m) * m


def _laplacian_tile_kernel(x1_ref, x2t_ref, o_ref, acc_ref, *, gamma, nc, dc, n_k):
    """Accumulates one (TN, TM) tile of sum_d |x1 - x2| over the D grid axis and
    applies exp(-gamma * .) at the last D step.

    x1_ref : (TN, TD)  rows of X1               (lanes = features)
    x2t_ref: (TD, TM)  X2 tile, pre-transposed  (lanes = output columns)
    o_ref  : (TN, TM)  output tile
    acc_ref: (TN, TM)  f32 VMEM scratch (only touched when n_k > 1)
    """
    tn, td = x1_ref.shape
    tm = x2t_ref.shape[1]
    n_row_blocks = tn // nc
    k = pl.program_id(3)

    if n_k > 1:
        @pl.when(k == 0)
        def _():
            acc_ref[...] = jnp.zeros_like(acc_ref)

    def row_block(rb, carry):
        r0 = pl.multiple_of(rb * nc, nc)
        if n_k > 1:
            acc = acc_ref[pl.ds(r0, nc), :]              # (nc, TM) f32 partial sums
        else:
            acc = jnp.zeros((nc, tm), jnp.float32)

        # Static loop over the TD-bounded feature extent.  x1 is read in full-lane
        # chunks; per feature d the x1 column (nc, 1) is lane-broadcast and the x2t
        # row (1, TM) is sublane-broadcast inside the subtract, so the only
        # materialized tensors are (nc, TM) vregs matching the accumulator layout.
        for d0 in range(0, td, dc):
            dsz = min(dc, td - d0)
            a = x1_ref[pl.ds(r0, nc), d0:d0 + dsz].astype(jnp.float32)    # (nc, dsz)
            for j in range(dsz):
                col = a[:, j:j + 1]                                        # (nc, 1)
                row = x2t_ref[d0 + j:d0 + j + 1, :].astype(jnp.float32)    # (1, TM)
                acc = acc + jnp.abs(col - row)                             # (nc, TM)

        if n_k > 1:
            acc_ref[pl.ds(r0, nc), :] = acc

            @pl.when(k == n_k - 1)
            def _():
                # f32 epilogue; exp lowers to the EUP (separate bundle slot).
                o_ref[pl.ds(r0, nc), :] = jnp.exp(-gamma * acc).astype(o_ref.dtype)
        else:
            o_ref[pl.ds(r0, nc), :] = jnp.exp(-gamma * acc).astype(o_ref.dtype)
        return carry

    if n_row_blocks <= 4:
        row_unroll = True                # fully unroll short loops
    elif n_row_blocks % 2 == 0:
        row_unroll = 2                   # overlap store epilogue with next block
    else:
        row_unroll = 1
    lax.fori_loop(0, n_row_blocks, row_block, 0, unroll=row_unroll)


def laplacian_kernel(x1, x2, *, gamma: float = 1.0):
    """K[..., i, j] = exp(-gamma * ||X1[..., i, :] - X2[..., j, :]||_1)."""
    if gamma <= 0:
        raise ValueError("Gamma must be positive for Laplacian kernel.")
    if x1.shape[-1] != x2.shape[-1]:
        raise ValueError(
            f"Input vectors must have the same feature dimension. "
            f"Got X1 dim {x1.shape[-1]} and X2 dim {x2.shape[-1]}"
        )
    batch_shape = x1.shape[:-2]
    if x2.shape[:-2] != batch_shape:
        raise ValueError("Leading batch dims of X1 and X2 must match.")

    N, D = x1.shape[-2], x1.shape[-1]
    M = x2.shape[-2]
    B = int(math.prod(batch_shape)) if batch_shape else 1

    # ---- tile selection -----------------------------------------------------
    TN = min(128, _round_up(N, 8))        # sublane-aligned row tile
    TM = min(512, _round_up(M, 128))      # lane-aligned column tile (lane-dense stores)
    Np = _round_up(N, TN)
    Mp = _round_up(M, TM)

    # v7x has 2 TensorCores: make sure tiny single-batch problems still produce
    # >= 2 steps on a parallel grid axis so both cores get work.
    if B * (Np // TN) * (Mp // TM) < 2 and N > 8:
        TN = _round_up((N + 1) // 2, 8)
        Np = _round_up(N, TN)

    # Feature axis: pad to a sublane multiple; stream big D through an "arbitrary"
    # reduction grid axis in TD-sized chunks (bounds per-step VMEM on all chips and
    # keeps the static in-kernel feature loop small).
    TD_MAX = 256
    Dp = _round_up(D, 8)
    if Dp <= TD_MAX:
        TD = Dp
    else:
        TD = TD_MAX                       # multiple of 128 (x1 lane dim) and 8 (x2t sublane dim)
        Dp = _round_up(Dp, TD)
    n_k = Dp // TD

    x1_f = x1.reshape((B, N, D))
    x2_f = x2.reshape((B, M, D))
    if (Np, Dp) != (N, D):
        x1_f = jnp.pad(x1_f, ((0, 0), (0, Np - N), (0, Dp - D)))
    if (Mp, Dp) != (M, D):
        x2_f = jnp.pad(x2_f, ((0, 0), (0, Mp - M), (0, Dp - D)))
    # Transpose X2 once in the wrapper (layout plumbing) so the kernel's x2 tile
    # arrives as (TD, TM) with the output columns on lanes.
    x2t_f = jnp.swapaxes(x2_f, -1, -2)    # (B, Dp, Mp)

    nc = 16 if TN % 16 == 0 else 8
    kernel = functools.partial(
        _laplacian_tile_kernel, gamma=float(gamma), nc=nc, dc=128, n_k=n_k
    )

    n_i, n_j = Np // TN, Mp // TM
    grid = (B, n_j, n_i, n_k)             # D-reduction axis innermost

    out_dtype = x1.dtype
    itemsize = jnp.dtype(out_dtype).itemsize
    cost = pl.CostEstimate(
        flops=3 * B * Np * Mp * Dp + 2 * B * Np * Mp,
        transcendentals=B * Np * Mp,
        # x1 streams once per M-tile; x2t is resident across the inner N-tile sweep
        # when D fits a single chunk, otherwise re-read once per N-tile.
        bytes_accessed=(B * Np * Dp * n_j
                        + B * Dp * Mp * (n_i if n_k > 1 else 1)
                        + B * Np * Mp) * itemsize,
    )

    out = pl.pallas_call(
        kernel,
        out_shape=jax.ShapeDtypeStruct((B, Np, Mp), out_dtype),
        grid_spec=pltpu.PrefetchScalarGridSpec(
            num_scalar_prefetch=0,
            grid=grid,
            in_specs=[
                pl.BlockSpec((pl.Squeezed(), TN, TD), lambda b, j, i, k: (b, i, k)),
                pl.BlockSpec((pl.Squeezed(), TD, TM), lambda b, j, i, k: (b, k, j)),
            ],
            out_specs=pl.BlockSpec(
                (pl.Squeezed(), TN, TM), lambda b, j, i, k: (b, i, j)
            ),
            scratch_shapes=[pltpu.VMEM((TN, TM), jnp.float32)],
        ),
        compiler_params=pltpu.CompilerParams(
            dimension_semantics=("parallel", "parallel", "parallel", "arbitrary"),
        ),
        cost_estimate=cost,
    )(x1_f, x2t_f)

    out = out[:, :N, :M]
    return out.reshape(batch_shape + (N, M))


def _reference(x1, x2, *, gamma):
    l1 = jnp.sum(jnp.abs(x1[..., :, None, :] - x2[..., None, :, :]), axis=-1)
    return jnp.exp(-gamma * l1)


if __name__ == "__main__":
    key = jax.random.PRNGKey(0)
    k1, k2 = jax.random.split(key)

    # Small shapes consistent with the module: X1 (..., N, D), X2 (..., M, D)
    B, N, M, D = 2, 16, 8, 32
    x1 = jax.random.normal(k1, (B, N, D), dtype=jnp.float32)
    x2 = jax.random.normal(k2, (B, M, D), dtype=jnp.float32)

    gamma = 0.5

    out = laplacian_kernel(x1, x2, gamma=gamma)
    out = jax.block_until_ready(out)

    ref = _reference(x1, x2, gamma=gamma)
    assert out.shape == (B, N, M), out.shape
    assert jnp.allclose(out, ref, atol=1e-4, rtol=1e-4), "Mismatch vs reference"

    print("KERNEL_OK")
</pallas_src>

<mosaic_0001>
module attributes {stable_mosaic.version = 11 : i64} {
  func.func @_laplacian_tile_kernel(%arg0: i32, %arg1: i32, %arg2: i32, %arg3: i32, %arg4: memref<1x16x32xf32, #tpu.memory_space<vmem>>, %arg5: memref<1x32x128xf32, #tpu.memory_space<vmem>>, %arg6: memref<1x16x128xf32, #tpu.memory_space<vmem>>, %arg7: memref<16x128xf32, #tpu.memory_space<vmem>>) attributes {dimension_semantics = [#tpu.dimension_semantics<parallel>, #tpu.dimension_semantics<parallel>, #tpu.dimension_semantics<parallel>, #tpu.dimension_semantics<arbitrary>], iteration_bounds = array<i64: 2, 1, 1, 1>, scalar_prefetch = 0 : i64, scratch_operands = 1 : i64, tpu.core_type = #tpu.core_type<tc>, window_params = [{transform_indices = @transform_0, window_bounds = array<i64: 1, 16, 32>}, {transform_indices = @transform_1, window_bounds = array<i64: 1, 32, 128>}, {transform_indices = @transform_2, window_bounds = array<i64: 1, 16, 128>}]} {
    %c0_i32 = arith.constant 0 : i32
    %c16_i32 = arith.constant 16 : i32
    %0 = arith.muli %c0_i32, %c16_i32 : i32
    %1 = tpu.assume_multiple %0, 16 : i32
    %cst = arith.constant 0.000000e+00 : f32
    %2 = vector.broadcast %cst : f32 to vector<16x128xf32>
    %c0 = arith.constant 0 : index
    %3 = arith.index_cast %1 : i32 to index
    %c0_0 = arith.constant 0 : index
    %4 = vector.load %arg4[%c0, %3, %c0_0] : memref<1x16x32xf32, #tpu.memory_space<vmem>>, vector<1x16x32xf32>
    %5 = vector.shape_cast %4 : vector<1x16x32xf32> to vector<16x32xf32>
    %6 = vector.extract_strided_slice %5 {offsets = [0, 0], sizes = [16, 1], strides = [1, 1]} : vector<16x32xf32> to vector<16x1xf32>
    %c0_1 = arith.constant 0 : index
    %c0_2 = arith.constant 0 : index
    %c0_3 = arith.constant 0 : index
    %7 = vector.load %arg5[%c0_1, %c0_2, %c0_3] : memref<1x32x128xf32, #tpu.memory_space<vmem>>, vector<1x1x128xf32>
    %8 = vector.shape_cast %7 : vector<1x1x128xf32> to vector<1x128xf32>
    %9 = vector.broadcast %6 : vector<16x1xf32> to vector<16x128xf32>
    %10 = vector.broadcast %8 : vector<1x128xf32> to vector<16x128xf32>
    %11 = arith.subf %9, %10 : vector<16x128xf32>
    %12 = math.absf %11 : vector<16x128xf32>
    %13 = arith.addf %2, %12 : vector<16x128xf32>
    %14 = vector.extract_strided_slice %5 {offsets = [0, 1], sizes = [16, 1], strides = [1, 1]} : vector<16x32xf32> to vector<16x1xf32>
    %c0_4 = arith.constant 0 : index
    %c1 = arith.constant 1 : index
    %c0_5 = arith.constant 0 : index
    %15 = vector.load %arg5[%c0_4, %c1, %c0_5] : memref<1x32x128xf32, #tpu.memory_space<vmem>>, vector<1x1x128xf32>
    %16 = vector.shape_cast %15 : vector<1x1x128xf32> to vector<1x128xf32>
    %17 = vector.broadcast %14 : vector<16x1xf32> to vector<16x128xf32>
    %18 = vector.broadcast %16 : vector<1x128xf32> to vector<16x128xf32>
    %19 = arith.subf %17, %18 : vector<16x128xf32>
    %20 = math.absf %19 : vector<16x128xf32>
    %21 = arith.addf %13, %20 : vector<16x128xf32>
    %22 = vector.extract_strided_slice %5 {offsets = [0, 2], sizes = [16, 1], strides = [1, 1]} : vector<16x32xf32> to vector<16x1xf32>
    %c0_6 = arith.constant 0 : index
    %c2 = arith.constant 2 : index
    %c0_7 = arith.constant 0 : index
    %23 = vector.load %arg5[%c0_6, %c2, %c0_7] : memref<1x32x128xf32, #tpu.memory_space<vmem>>, vector<1x1x128xf32>
    %24 = vector.shape_cast %23 : vector<1x1x128xf32> to vector<1x128xf32>
    %25 = vector.broadcast %22 : vector<16x1xf32> to vector<16x128xf32>
    %26 = vector.broadcast %24 : vector<1x128xf32> to vector<16x128xf32>
    %27 = arith.subf %25, %26 : vector<16x128xf32>
    %28 = math.absf %27 : vector<16x128xf32>
    %29 = arith.addf %21, %28 : vector<16x128xf32>
    %30 = vector.extract_strided_slice %5 {offsets = [0, 3], sizes = [16, 1], strides = [1, 1]} : vector<16x32xf32> to vector<16x1xf32>
    %c0_8 = arith.constant 0 : index
    %c3 = arith.constant 3 : index
    %c0_9 = arith.constant 0 : index
    %31 = vector.load %arg5[%c0_8, %c3, %c0_9] : memref<1x32x128xf32, #tpu.memory_space<vmem>>, vector<1x1x128xf32>
    %32 = vector.shape_cast %31 : vector<1x1x128xf32> to vector<1x128xf32>
    %33 = vector.broadcast %30 : vector<16x1xf32> to vector<16x128xf32>
    %34 = vector.broadcast %32 : vector<1x128xf32> to vector<16x128xf32>
    %35 = arith.subf %33, %34 : vector<16x128xf32>
    %36 = math.absf %35 : vector<16x128xf32>
    %37 = arith.addf %29, %36 : vector<16x128xf32>
    %38 = vector.extract_strided_slice %5 {offsets = [0, 4], sizes = [16, 1], strides = [1, 1]} : vector<16x32xf32> to vector<16x1xf32>
    %c0_10 = arith.constant 0 : index
    %c4 = arith.constant 4 : index
    %c0_11 = arith.constant 0 : index
    %39 = vector.load %arg5[%c0_10, %c4, %c0_11] : memref<1x32x128xf32, #tpu.memory_space<vmem>>, vector<1x1x128xf32>
    %40 = vector.shape_cast %39 : vector<1x1x128xf32> to vector<1x128xf32>
    %41 = vector.broadcast %38 : vector<16x1xf32> to vector<16x128xf32>
    %42 = vector.broadcast %40 : vector<1x128xf32> to vector<16x128xf32>
    %43 = arith.subf %41, %42 : vector<16x128xf32>
    %44 = math.absf %43 : vector<16x128xf32>
    %45 = arith.addf %37, %44 : vector<16x128xf32>
    %46 = vector.extract_strided_slice %5 {offsets = [0, 5], sizes = [16, 1], strides = [1, 1]} : vector<16x32xf32> to vector<16x1xf32>
    %c0_12 = arith.constant 0 : index
    %c5 = arith.constant 5 : index
    %c0_13 = arith.constant 0 : index
    %47 = vector.load %arg5[%c0_12, %c5, %c0_13] : memref<1x32x128xf32, #tpu.memory_space<vmem>>, vector<1x1x128xf32>
    %48 = vector.shape_cast %47 : vector<1x1x128xf32> to vector<1x128xf32>
    %49 = vector.broadcast %46 : vector<16x1xf32> to vector<16x128xf32>
    %50 = vector.broadcast %48 : vector<1x128xf32> to vector<16x128xf32>
    %51 = arith.subf %49, %50 : vector<16x128xf32>
    %52 = math.absf %51 : vector<16x128xf32>
    %53 = arith.addf %45, %52 : vector<16x128xf32>
    %54 = vector.extract_strided_slice %5 {offsets = [0, 6], sizes = [16, 1], strides = [1, 1]} : vector<16x32xf32> to vector<16x1xf32>
    %c0_14 = arith.constant 0 : index
    %c6 = arith.constant 6 : index
    %c0_15 = arith.constant 0 : index
    %55 = vector.load %arg5[%c0_14, %c6, %c0_15] : memref<1x32x128xf32, #tpu.memory_space<vmem>>, vector<1x1x128xf32>
    %56 = vector.shape_cast %55 : vector<1x1x128xf32> to vector<1x128xf32>
    %57 = vector.broadcast %54 : vector<16x1xf32> to vector<16x128xf32>
    %58 = vector.broadcast %56 : vector<1x128xf32> to vector<16x128xf32>
    %59 = arith.subf %57, %58 : vector<16x128xf32>
    %60 = math.absf %59 : vector<16x128xf32>
    %61 = arith.addf %53, %60 : vector<16x128xf32>
    %62 = vector.extract_strided_slice %5 {offsets = [0, 7], sizes = [16, 1], strides = [1, 1]} : vector<16x32xf32> to vector<16x1xf32>
    %c0_16 = arith.constant 0 : index
    %c7 = arith.constant 7 : index
    %c0_17 = arith.constant 0 : index
    %63 = vector.load %arg5[%c0_16, %c7, %c0_17] : memref<1x32x128xf32, #tpu.memory_space<vmem>>, vector<1x1x128xf32>
    %64 = vector.shape_cast %63 : vector<1x1x128xf32> to vector<1x128xf32>
    %65 = vector.broadcast %62 : vector<16x1xf32> to vector<16x128xf32>
    %66 = vector.broadcast %64 : vector<1x128xf32> to vector<16x128xf32>
    %67 = arith.subf %65, %66 : vector<16x128xf32>
    %68 = math.absf %67 : vector<16x128xf32>
    %69 = arith.addf %61, %68 : vector<16x128xf32>
    %70 = vector.extract_strided_slice %5 {offsets = [0, 8], sizes = [16, 1], strides = [1, 1]} : vector<16x32xf32> to vector<16x1xf32>
    %c0_18 = arith.constant 0 : index
    %c8 = arith.constant 8 : index
    %c0_19 = arith.constant 0 : index
    %71 = vector.load %arg5[%c0_18, %c8, %c0_19] : memref<1x32x128xf32, #tpu.memory_space<vmem>>, vector<1x1x128xf32>
    %72 = vector.shape_cast %71 : vector<1x1x128xf32> to vector<1x128xf32>
    %73 = vector.broadcast %70 : vector<16x1xf32> to vector<16x128xf32>
    %74 = vector.broadcast %72 : vector<1x128xf32> to vector<16x128xf32>
    %75 = arith.subf %73, %74 : vector<16x128xf32>
    %76 = math.absf %75 : vector<16x128xf32>
    %77 = arith.addf %69, %76 : vector<16x128xf32>
    %78 = vector.extract_strided_slice %5 {offsets = [0, 9], sizes = [16, 1], strides = [1, 1]} : vector<16x32xf32> to vector<16x1xf32>
    %c0_20 = arith.constant 0 : index
    %c9 = arith.constant 9 : index
    %c0_21 = arith.constant 0 : index
    %79 = vector.load %arg5[%c0_20, %c9, %c0_21] : memref<1x32x128xf32, #tpu.memory_space<vmem>>, vector<1x1x128xf32>
    %80 = vector.shape_cast %79 : vector<1x1x128xf32> to vector<1x128xf32>
    %81 = vector.broadcast %78 : vector<16x1xf32> to vector<16x128xf32>
    %82 = vector.broadcast %80 : vector<1x128xf32> to vector<16x128xf32>
    %83 = arith.subf %81, %82 : vector<16x128xf32>
    %84 = math.absf %83 : vector<16x128xf32>
    %85 = arith.addf %77, %84 : vector<16x128xf32>
    %86 = vector.extract_strided_slice %5 {offsets = [0, 10], sizes = [16, 1], strides = [1, 1]} : vector<16x32xf32> to vector<16x1xf32>
    %c0_22 = arith.constant 0 : index
    %c10 = arith.constant 10 : index
    %c0_23 = arith.constant 0 : index
    %87 = vector.load %arg5[%c0_22, %c10, %c0_23] : memref<1x32x128xf32, #tpu.memory_space<vmem>>, vector<1x1x128xf32>
    %88 = vector.shape_cast %87 : vector<1x1x128xf32> to vector<1x128xf32>
    %89 = vector.broadcast %86 : vector<16x1xf32> to vector<16x128xf32>
    %90 = vector.broadcast %88 : vector<1x128xf32> to vector<16x128xf32>
    %91 = arith.subf %89, %90 : vector<16x128xf32>
    %92 = math.absf %91 : vector<16x128xf32>
    %93 = arith.addf %85, %92 : vector<16x128xf32>
    %94 = vector.extract_strided_slice %5 {offsets = [0, 11], sizes = [16, 1], strides = [1, 1]} : vector<16x32xf32> to vector<16x1xf32>
    %c0_24 = arith.constant 0 : index
    %c11 = arith.constant 11 : index
    %c0_25 = arith.constant 0 : index
    %95 = vector.load %arg5[%c0_24, %c11, %c0_25] : memref<1x32x128xf32, #tpu.memory_space<vmem>>, vector<1x1x128xf32>
    %96 = vector.shape_cast %95 : vector<1x1x128xf32> to vector<1x128xf32>
    %97 = vector.broadcast %94 : vector<16x1xf32> to vector<16x128xf32>
    %98 = vector.broadcast %96 : vector<1x128xf32> to vector<16x128xf32>
    %99 = arith.subf %97, %98 : vector<16x128xf32>
    %100 = math.absf %99 : vector<16x128xf32>
    %101 = arith.addf %93, %100 : vector<16x128xf32>
    %102 = vector.extract_strided_slice %5 {offsets = [0, 12], sizes = [16, 1], strides = [1, 1]} : vector<16x32xf32> to vector<16x1xf32>
    %c0_26 = arith.constant 0 : index
    %c12 = arith.constant 12 : index
    %c0_27 = arith.constant 0 : index
    %103 = vector.load %arg5[%c0_26, %c12, %c0_27] : memref<1x32x128xf32, #tpu.memory_space<vmem>>, vector<1x1x128xf32>
    %104 = vector.shape_cast %103 : vector<1x1x128xf32> to vector<1x128xf32>
    %105 = vector.broadcast %102 : vector<16x1xf32> to vector<16x128xf32>
    %106 = vector.broadcast %104 : vector<1x128xf32> to vector<16x128xf32>
    %107 = arith.subf %105, %106 : vector<16x128xf32>
    %108 = math.absf %107 : vector<16x128xf32>
    %109 = arith.addf %101, %108 : vector<16x128xf32>
    %110 = vector.extract_strided_slice %5 {offsets = [0, 13], sizes = [16, 1], strides = [1, 1]} : vector<16x32xf32> to vector<16x1xf32>
    %c0_28 = arith.constant 0 : index
    %c13 = arith.constant 13 : index
    %c0_29 = arith.constant 0 : index
    %111 = vector.load %arg5[%c0_28, %c13, %c0_29] : memref<1x32x128xf32, #tpu.memory_space<vmem>>, vector<1x1x128xf32>
    %112 = vector.shape_cast %111 : vector<1x1x128xf32> to vector<1x128xf32>
    %113 = vector.broadcast %110 : vector<16x1xf32> to vector<16x128xf32>
    %114 = vector.broadcast %112 : vector<1x128xf32> to vector<16x128xf32>
    %115 = arith.subf %113, %114 : vector<16x128xf32>
    %116 = math.absf %115 : vector<16x128xf32>
    %117 = arith.addf %109, %116 : vector<16x128xf32>
    %118 = vector.extract_strided_slice %5 {offsets = [0, 14], sizes = [16, 1], strides = [1, 1]} : vector<16x32xf32> to vector<16x1xf32>
    %c0_30 = arith.constant 0 : index
    %c14 = arith.constant 14 : index
    %c0_31 = arith.constant 0 : index
    %119 = vector.load %arg5[%c0_30, %c14, %c0_31] : memref<1x32x128xf32, #tpu.memory_space<vmem>>, vector<1x1x128xf32>
    %120 = vector.shape_cast %119 : vector<1x1x128xf32> to vector<1x128xf32>
    %121 = vector.broadcast %118 : vector<16x1xf32> to vector<16x128xf32>
    %122 = vector.broadcast %120 : vector<1x128xf32> to vector<16x128xf32>
    %123 = arith.subf %121, %122 : vector<16x128xf32>
    %124 = math.absf %123 : vector<16x128xf32>
    %125 = arith.addf %117, %124 : vector<16x128xf32>
    %126 = vector.extract_strided_slice %5 {offsets = [0, 15], sizes = [16, 1], strides = [1, 1]} : vector<16x32xf32> to vector<16x1xf32>
    %c0_32 = arith.constant 0 : index
    %c15 = arith.constant 15 : index
    %c0_33 = arith.constant 0 : index
    %127 = vector.load %arg5[%c0_32, %c15, %c0_33] : memref<1x32x128xf32, #tpu.memory_space<vmem>>, vector<1x1x128xf32>
    %128 = vector.shape_cast %127 : vector<1x1x128xf32> to vector<1x128xf32>
    %129 = vector.broadcast %126 : vector<16x1xf32> to vector<16x128xf32>
    %130 = vector.broadcast %128 : vector<1x128xf32> to vector<16x128xf32>
    %131 = arith.subf %129, %130 : vector<16x128xf32>
    %132 = math.absf %131 : vector<16x128xf32>
    %133 = arith.addf %125, %132 : vector<16x128xf32>
    %134 = vector.extract_strided_slice %5 {offsets = [0, 16], sizes = [16, 1], strides = [1, 1]} : vector<16x32xf32> to vector<16x1xf32>
    %c0_34 = arith.constant 0 : index
    %c16 = arith.constant 16 : index
    %c0_35 = arith.constant 0 : index
    %135 = vector.load %arg5[%c0_34, %c16, %c0_35] : memref<1x32x128xf32, #tpu.memory_space<vmem>>, vector<1x1x128xf32>
    %136 = vector.shape_cast %135 : vector<1x1x128xf32> to vector<1x128xf32>
    %137 = vector.broadcast %134 : vector<16x1xf32> to vector<16x128xf32>
    %138 = vector.broadcast %136 : vector<1x128xf32> to vector<16x128xf32>
    %139 = arith.subf %137, %138 : vector<16x128xf32>
    %140 = math.absf %139 : vector<16x128xf32>
    %141 = arith.addf %133, %140 : vector<16x128xf32>
    %142 = vector.extract_strided_slice %5 {offsets = [0, 17], sizes = [16, 1], strides = [1, 1]} : vector<16x32xf32> to vector<16x1xf32>
    %c0_36 = arith.constant 0 : index
    %c17 = arith.constant 17 : index
    %c0_37 = arith.constant 0 : index
    %143 = vector.load %arg5[%c0_36, %c17, %c0_37] : memref<1x32x128xf32, #tpu.memory_space<vmem>>, vector<1x1x128xf32>
    %144 = vector.shape_cast %143 : vector<1x1x128xf32> to vector<1x128xf32>
    %145 = vector.broadcast %142 : vector<16x1xf32> to vector<16x128xf32>
    %146 = vector.broadcast %144 : vector<1x128xf32> to vector<16x128xf32>
    %147 = arith.subf %145, %146 : vector<16x128xf32>
    %148 = math.absf %147 : vector<16x128xf32>
    %149 = arith.addf %141, %148 : vector<16x128xf32>
    %150 = vector.extract_strided_slice %5 {offsets = [0, 18], sizes = [16, 1], strides = [1, 1]} : vector<16x32xf32> to vector<16x1xf32>
    %c0_38 = arith.constant 0 : index
    %c18 = arith.constant 18 : index
    %c0_39 = arith.constant 0 : index
    %151 = vector.load %arg5[%c0_38, %c18, %c0_39] : memref<1x32x128xf32, #tpu.memory_space<vmem>>, vector<1x1x128xf32>
    %152 = vector.shape_cast %151 : vector<1x1x128xf32> to vector<1x128xf32>
    %153 = vector.broadcast %150 : vector<16x1xf32> to vector<16x128xf32>
    %154 = vector.broadcast %152 : vector<1x128xf32> to vector<16x128xf32>
    %155 = arith.subf %153, %154 : vector<16x128xf32>
    %156 = math.absf %155 : vector<16x128xf32>
    %157 = arith.addf %149, %156 : vector<16x128xf32>
    %158 = vector.extract_strided_slice %5 {offsets = [0, 19], sizes = [16, 1], strides = [1, 1]} : vector<16x32xf32> to vector<16x1xf32>
    %c0_40 = arith.constant 0 : index
    %c19 = arith.constant 19 : index
    %c0_41 = arith.constant 0 : index
    %159 = vector.load %arg5[%c0_40, %c19, %c0_41] : memref<1x32x128xf32, #tpu.memory_space<vmem>>, vector<1x1x128xf32>
    %160 = vector.shape_cast %159 : vector<1x1x128xf32> to vector<1x128xf32>
    %161 = vector.broadcast %158 : vector<16x1xf32> to vector<16x128xf32>
    %162 = vector.broadcast %160 : vector<1x128xf32> to vector<16x128xf32>
    %163 = arith.subf %161, %162 : vector<16x128xf32>
    %164 = math.absf %163 : vector<16x128xf32>
    %165 = arith.addf %157, %164 : vector<16x128xf32>
    %166 = vector.extract_strided_slice %5 {offsets = [0, 20], sizes = [16, 1], strides = [1, 1]} : vector<16x32xf32> to vector<16x1xf32>
    %c0_42 = arith.constant 0 : index
    %c20 = arith.constant 20 : index
    %c0_43 = arith.constant 0 : index
    %167 = vector.load %arg5[%c0_42, %c20, %c0_43] : memref<1x32x128xf32, #tpu.memory_space<vmem>>, vector<1x1x128xf32>
    %168 = vector.shape_cast %167 : vector<1x1x128xf32> to vector<1x128xf32>
    %169 = vector.broadcast %166 : vector<16x1xf32> to vector<16x128xf32>
    %170 = vector.broadcast %168 : vector<1x128xf32> to vector<16x128xf32>
    %171 = arith.subf %169, %170 : vector<16x128xf32>
    %172 = math.absf %171 : vector<16x128xf32>
    %173 = arith.addf %165, %172 : vector<16x128xf32>
    %174 = vector.extract_strided_slice %5 {offsets = [0, 21], sizes = [16, 1], strides = [1, 1]} : vector<16x32xf32> to vector<16x1xf32>
    %c0_44 = arith.constant 0 : index
    %c21 = arith.constant 21 : index
    %c0_45 = arith.constant 0 : index
    %175 = vector.load %arg5[%c0_44, %c21, %c0_45] : memref<1x32x128xf32, #tpu.memory_space<vmem>>, vector<1x1x128xf32>
    %176 = vector.shape_cast %175 : vector<1x1x128xf32> to vector<1x128xf32>
    %177 = vector.broadcast %174 : vector<16x1xf32> to vector<16x128xf32>
    %178 = vector.broadcast %176 : vector<1x128xf32> to vector<16x128xf32>
    %179 = arith.subf %177, %178 : vector<16x128xf32>
    %180 = math.absf %179 : vector<16x128xf32>
    %181 = arith.addf %173, %180 : vector<16x128xf32>
    %182 = vector.extract_strided_slice %5 {offsets = [0, 22], sizes = [16, 1], strides = [1, 1]} : vector<16x32xf32> to vector<16x1xf32>
    %c0_46 = arith.constant 0 : index
    %c22 = arith.constant 22 : index
    %c0_47 = arith.constant 0 : index
    %183 = vector.load %arg5[%c0_46, %c22, %c0_47] : memref<1x32x128xf32, #tpu.memory_space<vmem>>, vector<1x1x128xf32>
    %184 = vector.shape_cast %183 : vector<1x1x128xf32> to vector<1x128xf32>
    %185 = vector.broadcast %182 : vector<16x1xf32> to vector<16x128xf32>
    %186 = vector.broadcast %184 : vector<1x128xf32> to vector<16x128xf32>
    %187 = arith.subf %185, %186 : vector<16x128xf32>
    %188 = math.absf %187 : vector<16x128xf32>
    %189 = arith.addf %181, %188 : vector<16x128xf32>
    %190 = vector.extract_strided_slice %5 {offsets = [0, 23], sizes = [16, 1], strides = [1, 1]} : vector<16x32xf32> to vector<16x1xf32>
    %c0_48 = arith.constant 0 : index
    %c23 = arith.constant 23 : index
    %c0_49 = arith.constant 0 : index
    %191 = vector.load %arg5[%c0_48, %c23, %c0_49] : memref<1x32x128xf32, #tpu.memory_space<vmem>>, vector<1x1x128xf32>
    %192 = vector.shape_cast %191 : vector<1x1x128xf32> to vector<1x128xf32>
    %193 = vector.broadcast %190 : vector<16x1xf32> to vector<16x128xf32>
    %194 = vector.broadcast %192 : vector<1x128xf32> to vector<16x128xf32>
    %195 = arith.subf %193, %194 : vector<16x128xf32>
    %196 = math.absf %195 : vector<16x128xf32>
    %197 = arith.addf %189, %196 : vector<16x128xf32>
    %198 = vector.extract_strided_slice %5 {offsets = [0, 24], sizes = [16, 1], strides = [1, 1]} : vector<16x32xf32> to vector<16x1xf32>
    %c0_50 = arith.constant 0 : index
    %c24 = arith.constant 24 : index
    %c0_51 = arith.constant 0 : index
    %199 = vector.load %arg5[%c0_50, %c24, %c0_51] : memref<1x32x128xf32, #tpu.memory_space<vmem>>, vector<1x1x128xf32>
    %200 = vector.shape_cast %199 : vector<1x1x128xf32> to vector<1x128xf32>
    %201 = vector.broadcast %198 : vector<16x1xf32> to vector<16x128xf32>
    %202 = vector.broadcast %200 : vector<1x128xf32> to vector<16x128xf32>
    %203 = arith.subf %201, %202 : vector<16x128xf32>
    %204 = math.absf %203 : vector<16x128xf32>
    %205 = arith.addf %197, %204 : vector<16x128xf32>
    %206 = vector.extract_strided_slice %5 {offsets = [0, 25], sizes = [16, 1], strides = [1, 1]} : vector<16x32xf32> to vector<16x1xf32>
    %c0_52 = arith.constant 0 : index
    %c25 = arith.constant 25 : index
    %c0_53 = arith.constant 0 : index
    %207 = vector.load %arg5[%c0_52, %c25, %c0_53] : memref<1x32x128xf32, #tpu.memory_space<vmem>>, vector<1x1x128xf32>
    %208 = vector.shape_cast %207 : vector<1x1x128xf32> to vector<1x128xf32>
    %209 = vector.broadcast %206 : vector<16x1xf32> to vector<16x128xf32>
    %210 = vector.broadcast %208 : vector<1x128xf32> to vector<16x128xf32>
    %211 = arith.subf %209, %210 : vector<16x128xf32>
    %212 = math.absf %211 : vector<16x128xf32>
    %213 = arith.addf %205, %212 : vector<16x128xf32>
    %214 = vector.extract_strided_slice %5 {offsets = [0, 26], sizes = [16, 1], strides = [1, 1]} : vector<16x32xf32> to vector<16x1xf32>
    %c0_54 = arith.constant 0 : index
    %c26 = arith.constant 26 : index
    %c0_55 = arith.constant 0 : index
    %215 = vector.load %arg5[%c0_54, %c26, %c0_55] : memref<1x32x128xf32, #tpu.memory_space<vmem>>, vector<1x1x128xf32>
    %216 = vector.shape_cast %215 : vector<1x1x128xf32> to vector<1x128xf32>
    %217 = vector.broadcast %214 : vector<16x1xf32> to vector<16x128xf32>
    %218 = vector.broadcast %216 : vector<1x128xf32> to vector<16x128xf32>
    %219 = arith.subf %217, %218 : vector<16x128xf32>
    %220 = math.absf %219 : vector<16x128xf32>
    %221 = arith.addf %213, %220 : vector<16x128xf32>
    %222 = vector.extract_strided_slice %5 {offsets = [0, 27], sizes = [16, 1], strides = [1, 1]} : vector<16x32xf32> to vector<16x1xf32>
    %c0_56 = arith.constant 0 : index
    %c27 = arith.constant 27 : index
    %c0_57 = arith.constant 0 : index
    %223 = vector.load %arg5[%c0_56, %c27, %c0_57] : memref<1x32x128xf32, #tpu.memory_space<vmem>>, vector<1x1x128xf32>
    %224 = vector.shape_cast %223 : vector<1x1x128xf32> to vector<1x128xf32>
    %225 = vector.broadcast %222 : vector<16x1xf32> to vector<16x128xf32>
    %226 = vector.broadcast %224 : vector<1x128xf32> to vector<16x128xf32>
    %227 = arith.subf %225, %226 : vector<16x128xf32>
    %228 = math.absf %227 : vector<16x128xf32>
    %229 = arith.addf %221, %228 : vector<16x128xf32>
    %230 = vector.extract_strided_slice %5 {offsets = [0, 28], sizes = [16, 1], strides = [1, 1]} : vector<16x32xf32> to vector<16x1xf32>
    %c0_58 = arith.constant 0 : index
    %c28 = arith.constant 28 : index
    %c0_59 = arith.constant 0 : index
    %231 = vector.load %arg5[%c0_58, %c28, %c0_59] : memref<1x32x128xf32, #tpu.memory_space<vmem>>, vector<1x1x128xf32>
    %232 = vector.shape_cast %231 : vector<1x1x128xf32> to vector<1x128xf32>
    %233 = vector.broadcast %230 : vector<16x1xf32> to vector<16x128xf32>
    %234 = vector.broadcast %232 : vector<1x128xf32> to vector<16x128xf32>
    %235 = arith.subf %233, %234 : vector<16x128xf32>
    %236 = math.absf %235 : vector<16x128xf32>
    %237 = arith.addf %229, %236 : vector<16x128xf32>
    %238 = vector.extract_strided_slice %5 {offsets = [0, 29], sizes = [16, 1], strides = [1, 1]} : vector<16x32xf32> to vector<16x1xf32>
    %c0_60 = arith.constant 0 : index
    %c29 = arith.constant 29 : index
    %c0_61 = arith.constant 0 : index
    %239 = vector.load %arg5[%c0_60, %c29, %c0_61] : memref<1x32x128xf32, #tpu.memory_space<vmem>>, vector<1x1x128xf32>
    %240 = vector.shape_cast %239 : vector<1x1x128xf32> to vector<1x128xf32>
    %241 = vector.broadcast %238 : vector<16x1xf32> to vector<16x128xf32>
    %242 = vector.broadcast %240 : vector<1x128xf32> to vector<16x128xf32>
    %243 = arith.subf %241, %242 : vector<16x128xf32>
    %244 = math.absf %243 : vector<16x128xf32>
    %245 = arith.addf %237, %244 : vector<16x128xf32>
    %246 = vector.extract_strided_slice %5 {offsets = [0, 30], sizes = [16, 1], strides = [1, 1]} : vector<16x32xf32> to vector<16x1xf32>
    %c0_62 = arith.constant 0 : index
    %c30 = arith.constant 30 : index
    %c0_63 = arith.constant 0 : index
    %247 = vector.load %arg5[%c0_62, %c30, %c0_63] : memref<1x32x128xf32, #tpu.memory_space<vmem>>, vector<1x1x128xf32>
    %248 = vector.shape_cast %247 : vector<1x1x128xf32> to vector<1x128xf32>
    %249 = vector.broadcast %246 : vector<16x1xf32> to vector<16x128xf32>
    %250 = vector.broadcast %248 : vector<1x128xf32> to vector<16x128xf32>
    %251 = arith.subf %249, %250 : vector<16x128xf32>
    %252 = math.absf %251 : vector<16x128xf32>
    %253 = arith.addf %245, %252 : vector<16x128xf32>
    %254 = vector.extract_strided_slice %5 {offsets = [0, 31], sizes = [16, 1], strides = [1, 1]} : vector<16x32xf32> to vector<16x1xf32>
    %c0_64 = arith.constant 0 : index
    %c31 = arith.constant 31 : index
    %c0_65 = arith.constant 0 : index
    %255 = vector.load %arg5[%c0_64, %c31, %c0_65] : memref<1x32x128xf32, #tpu.memory_space<vmem>>, vector<1x1x128xf32>
    %256 = vector.shape_cast %255 : vector<1x1x128xf32> to vector<1x128xf32>
    %257 = vector.broadcast %254 : vector<16x1xf32> to vector<16x128xf32>
    %258 = vector.broadcast %256 : vector<1x128xf32> to vector<16x128xf32>
    %259 = arith.subf %257, %258 : vector<16x128xf32>
    %260 = math.absf %259 : vector<16x128xf32>
    %261 = arith.addf %253, %260 : vector<16x128xf32>
    %cst_66 = arith.constant -5.000000e-01 : f32
    %262 = vector.broadcast %cst_66 : f32 to vector<16x128xf32>
    %263 = arith.mulf %262, %261 : vector<16x128xf32>
    %264 = math.exp %263 : vector<16x128xf32>
    %c0_67 = arith.constant 0 : index
    %265 = arith.index_cast %1 : i32 to index
    %c0_68 = arith.constant 0 : index
    %266 = vector.load %arg6[%c0_67, %265, %c0_68] : memref<1x16x128xf32, #tpu.memory_space<vmem>>, vector<1x16x128xf32>
    %267 = vector.shape_cast %266 : vector<1x16x128xf32> to vector<16x128xf32>
    %268 = vector.shape_cast %264 : vector<16x128xf32> to vector<1x16x128xf32>
    tpu.vector_store %arg6[%c0_67, %265, %c0_68], %268 {strides = array<i32>} : memref<1x16x128xf32, #tpu.memory_space<vmem>>, vector<1x16x128xf32>,
    %c1_i32 = arith.constant 1 : i32
    return
  }
  func.func @transform_0(%arg0: i32, %arg1: i32, %arg2: i32, %arg3: i32) -> (i32, i32, i32) {
    %c0_i32 = arith.constant 0 : i32
    return %arg0, %arg2, %arg3 : i32, i32, i32
  }
  func.func @transform_1(%arg0: i32, %arg1: i32, %arg2: i32, %arg3: i32) -> (i32, i32, i32) {
    %c0_i32 = arith.constant 0 : i32
    return %arg0, %arg3, %arg1 : i32, i32, i32
  }
  func.func @transform_2(%arg0: i32, %arg1: i32, %arg2: i32, %arg3: i32) -> (i32, i32, i32) {
    %c0_i32 = arith.constant 0 : i32
    return %arg0, %arg2, %arg1 : i32, i32, i32
  }
}

</mosaic_0001>

<bundles_post_ra>
// kernel: tpu_custom_call.1
= control target key start
LH: loop header
LB: loop body
LE: loop exit
PB: predicated region body
PF: predicated region fallthrough
CT: control target
= control target key end

     0   :  { %7 = vsyncpa [#allocation4], 0  ;;  %s1605_s0 = inlined_call_operand.hbm [shape: f32[2,16,32], index: 0, kind: input, shape index: {}]   ;;  %s1606_s1 = inlined_call_operand.hbm [shape: f32[2,32,128], index: 1, kind: input, shape index: {}]   ;;  %s1607_s2 = inlined_call_operand.hbm [shape: f32[2,16,128], index: 2, kind: output, shape index: {}]  }
   0x1   :  { %9 = vsyncpa [#allocation4 + $0x1], 0 }
   0x2   :  { %10 = vsyncpa [#allocation7], 0 }
   0x3   :  { %12 = vsyncpa [#allocation7 + $0x1], 0 }
   0x4   :  { %13 = vsyncpa [#allocation5], 0 }
   0x5   :  { %15 = vsyncpa [#allocation5 + $0x1], 0  ;;  %s1337_s9 = smov 0   ;;  %s1339_s10 = smov 0  }
   0x6   :  { %s1341_s11 = smov 0   ;;  %s1343_s12 = smov 0  }
   0x7   :  { %s1345_s13 = smov 0   ;;  %s1347_s14 = smov 0  }
   0x8 LB: > { %s915_s15 = sadd.s32 4294967295, %s1284_s14   ;;  %s916_s16 = sadd.s32 4294967294, %s1284_s14   ;;  %s1284_s14 = sphi %s1347_s14, %s21_s14   ;;  %s1280_s13 = sphi %s1345_s13, %s1617_s13   ;;  %s1276_s12 = sphi %s1343_s12, %s1616_s12   ;;  %s1272_s11 = sphi %s1341_s11, %s1615_s11   ;;  %s1268_s10 = sphi %s1339_s10, %s1614_s10   ;;  %s1264_s9 = sphi %s1337_s9, %s1613_s9  }
   0x9   : > { %s47_s17 = sadd.s32 1, %s1280_s13  ;;  %s58_s18 = sadd.s32 1, %s1272_s11 }
   0xa   : > { %p49_p0 = scmp.ge.s32.totalorder %s47_s17, 2  ;;  %p65_p1 = scmp.ne.s32.totalorder %s1272_s11, %s1268_s10 }
   0xb   : > { %p66_p2 = scmp.eq.s32.totalorder %s1284_s14, 0  ;;  %p71_p3 = scmp.ne.s32.totalorder %s1268_s10, %s1264_s9 }
   0xc   : > { %s1619_s17 = smov (%p49_p0, %s47_s17), 0  ;;  %p72_p5 = scmp.eq.s32.totalorder %s915_s15, 0 }
   0xd   : > { %p1378_p4 = por %p66_p2, %p65_p1  ;;  %s51_s20 = ssub.s32 %s1280_s13, %s1619_s17 }
   0xe   : > { %p129_p6 = scmp.eq.s32.totalorder %s915_s15, 1  ;;  %p56_p7 = scmp.eq.s32.totalorder %s51_s20, 0 }
   0xf   : > { %p1384_p8 = por %p72_p5, %p71_p3  ;;  %p135_p10 = scmp.eq.s32.totalorder %s916_s16, 1 }
  0x10   : > { %p1388_p9 = por %p129_p6, %p65_p1  ;;  %p918_p12 = scmp.ge.s32.totalorder %s1284_s14, 2 }
  0x11   : > { %s1393_s23 = scalar_select %p56_p7, %s1272_s11, %s58_s18  }
  0x12   : > { %p1395_p11 = por %p135_p10, %p71_p3  ;;  %p954_p13 = scmp.lt.s32.totalorder %s1284_s14, 2 }
  0x13   : > { %s1402_s25 = sand.u32 1, %s1272_s11   ;;  %s934_s27 = sshll.u32 %s1280_s13, 4 }
  0x14   : > { %s919_s26 = sshll.u32 %s1402_s25, 4  ;;  %s167_s30 = scalar_lea.hbm %s1605_s0, %s934_s27 }
  0x15   : > { %s159_s3 = scalar_lea.vmem [#allocation3], %s919_s26  ;;  %s168_s5 = sshll.u32 %s167_s30, 4  ;;  %s169_s5 = int_to_ptr.hbm [resolvable:$true] %s168_s5 }
  0x16   : > { %s170_s4 = sshll.u32 %s159_s3, 4  ;;  %p1411_p0 = pnand %p954_p13, %p1378_p4  ;;  %s171_s4 = int_to_ptr.vmem [resolvable:$true] %s170_s4 }
  0x17   : > { %p925_p1 = scmp.ge.s32.totalorder %s1284_s14, 1  ;;  %s156_s7 = scalar_lea.sflag [#allocation4], %s1402_s25 }
  0x18   : > { %s1286_s8 = smov 128   ;;  %s1287_s15 = smov 8  }
  0x19   : > { %946 = dma.hbm_to_vmem [thread:$0]  (!%p1411_p0), %s169_s5, 256, %s171_s4, %s156_s7, %s1286_s8, %s1286_s8, %s1287_s15  }
  0x1a   : > { %p203_p2 = scmp.lt.s32.totalorder %s1284_s14, 3  ;;  %s922_s16 = sshll.u32 %s1402_s25, 5 }
  0x1b   : > { %s935_s18 = sshll.u32 %s1280_s13, 5  ;;  %s184_s27 = scalar_lea.vmem [#allocation6], %s922_s16 }
  0x1c   : > { %p204_p3 = pnand %p925_p1, %p203_p2  ;;  %s192_s19 = scalar_lea.hbm %s1606_s1, %s935_s18 }
  0x1d   : > { %s195_s28 = sshll.u32 %s184_s27, 4  ;;  %s193_s29 = sshll.u32 %s192_s19, 4  ;;  %s196_s28 = int_to_ptr.vmem [resolvable:$true] %s195_s28  ;;  %s194_s29 = int_to_ptr.hbm [resolvable:$true] %s193_s29 }
  0x1e   : > { %s181_s30 = scalar_lea.sflag [#allocation7], %s1402_s25  ;;  %207 = sbr.rel (%p204_p3) target bundleno = 392 (0x188), region = 28 }
  0x1f   : > { %949 = dma.hbm_to_vmem [thread:$0]  (!%p1411_p0), %s194_s29, 512, %s196_s28, %s181_s30, %s1286_s8, %s1286_s8, %s1287_s15  }
  0x20   : > { %s1429_s3 = sand.u32 (!%p204_p3), 1, %s1268_s10  }
  0x21   : > { %s926_s4 = sshll.u32 (!%p204_p3), %s1429_s3, 4  ;;  %s210_s5 = scalar_lea.sflag (!%p204_p3), [#allocation4], %s1429_s3 }
  0x22   : > { %s213_s7 = scalar_lea.vmem (!%p204_p3), [#allocation3], %s926_s4 }
  0x23   : > { %1251 = dma.done.wait (%p1384_p8), %s210_s5, 256  }
  0x24   : > { %1253 = vsyncadd (%p1384_p8), %s210_s5, 4294967040  ;;  %s927_s25 = sshll.u32 %s1429_s3, 5  ;;  %s220_s6 = scalar_lea.sflag [#allocation7], %s1429_s3 }
  0x25   : > { %s1441_s8 = scalar_lea.vmem [#allocation6], %s927_s25 }
  0x26   : > { %1255 = dma.done.wait (%p1384_p8), %s220_s6, 512  }
  0x27   : > { %1257 = vsyncadd (%p1384_p8), %s220_s6, 4294966784  ;;  %v1288_v0 = vmov 1   ;;  %v1289_v1 = vmov 0   ;;  %v1290_v2 = vmov 2   ;;  %v1447_v3 = vld [vmem:[%s213_s7] sm:$0xff]  ;;  %v1452_v4 = vld [vmem:[%s213_s7 + $0x8] sm:$0xff] }
  0x28   : > { %1041 = vset.pattern.permute.xlu1 %v1288_v0  ;;  %1040 = vset.pattern.permute.xlu0 %v1289_v1  ;;  %v1291_v5 = vmov 3   ;;  %v1292_v6 = vmov 4   ;;  %v1293_v7 = vmov 5   ;;  %v1294_v8 = vmov 6   ;;  %v1102_v24 = vld [vmem:[%s1441_s8 + $0x2] ss:$0 sm:$0xff] }
  0x29   : > { %1042 = vset.pattern.permute.xlu2 %v1290_v2  ;;  %275 = vperm.xlu1 %1041, %v1447_v3   ;;  %v1295_v9 = vmov 8   ;;  %v1296_v10 = vmov 7   ;;  %v1297_v11 = vmov 10   ;;  %v1298_v12 = vmov 13   ;;  %v1103_v25 = vld [vmem:[%s1441_s8 + $0x1] ss:$0 sm:$0xff] }
  0x2a   : > { %258 = vperm.xlu0 %1040, %v1447_v3   ;;  %291 = vperm.xlu2 %1042, %v1447_v3   ;;  %v1299_v13 = vmov 9   ;;  %v1300_v14 = vmov 15   ;;  %v1301_v15 = vmov 11   ;;  %v1302_v16 = vmov 12   ;;  %v1104_v26 = vld [vmem:[%s1441_s8] ss:$0 sm:$0xff] }
  0x2b   : > { %v1303_v17 = vmov 18   ;;  %v1304_v18 = vmov 14   ;;  %v1305_v21 = vmov 20   ;;  %v1306_v22 = vmov 16   ;;  %v1105_v50 = vld [vmem:[%s1441_s8 + $0x4] ss:$0 sm:$0xff] }
  0x2c   : > { %v1307_v32 = vmov 17   ;;  %v1308_v39 = vmov 23   ;;  %v1309_v47 = vmov 19   ;;  %v1106_v51 = vld [vmem:[%s1441_s8 + $0x5] ss:$0 sm:$0xff]  ;;  %s936_s21 = sshll.u32 %s1276_s12, 4 }
  0x2d   : > { %v1107_v52 = vld [vmem:[%s1441_s8 + $0x3] ss:$0 sm:$0xff]  ;;  %s792_s18 = scalar_lea.hbm %s1607_s2, %s936_s21  ;;  %s249_s20 = scalar_lea.vmem [#allocation8], %s926_s4 }
  0x2e   : > { %s793_s26 = sshll.u32 %s249_s20, 4  ;;  %s795_s19 = sshll.u32 %s792_s18, 4  ;;  %s794_s26 = int_to_ptr.vmem [resolvable:$true] %s793_s26  ;;  %s796_s19 = int_to_ptr.hbm [resolvable:$true] %s795_s19 }
  0x2f   : > { %s778_s27 = scalar_lea.sflag [#allocation5], %s1429_s3  ;;  %s1212_s12 = sshra.s32 %s796_s19, 4  ;;  %s1213_s12 = int_to_ptr.hbm [resolvable:$true] %s1212_s12 }
  0x30   : > { %s1214_s28 = scalar_lea.hbm %s1213_s12, 16  ;;  %s1218_s5 = scalar_lea.hbm %s1607_s2, 32 }
  0x31   : > { %279 = vperm.xlu1 %1041, %v1452_v4   ;;  %p1215_p4 = scmp.ne.s32.totalorder %s1213_s12, %s1214_s28  ;;  %p1219_p7 = scmp.lt.s32.totalorder %s1213_s12, %s1607_s2 }
  0x32   : > { %263 = vperm.xlu0 %1040, %v1452_v4   ;;  %295 = vperm.xlu2 %1042, %v1452_v4   ;;  %p1220_p8 = scmp.lt.s32.totalorder %s1218_s5, %s1214_s28 }
  0x33   : > { %p1216_p5 = pnand %p1215_p4, %p1388_p9 }
  0x34   : > { %p1221_p10 = por %p1220_p8, %p1219_p7 }
  0x35   : > { %p1217_p6 = pneg %p1216_p5 }
  0x37   : > { %p1222_p13 = pnand %p1221_p10, %p1217_p6 }
  0x39   : > { %1044 = vset.pattern.permute.xlu1 %v1291_v5 }
  0x3a   : > { %1043 = vset.pattern.permute.xlu0 %v1291_v5  ;;  %311 = vperm.xlu1 %1044, %v1452_v4   ;;  %v1108_v5 = vld [vmem:[%s1441_s8 + $0x6] ss:$0 sm:$0xff] }
  0x3b   : > { %307 = vperm.xlu0 %1043, %v1447_v3   ;;  %1045 = vset.pattern.permute.xlu2 %v1292_v6 }
  0x3c   : > { %323 = vperm.xlu2 %1045, %v1447_v3  }
  0x42   : > { %1046 = vset.pattern.permute.xlu1 %v1292_v6 }
  0x43   : > { %1048 = vset.pattern.permute.xlu0 %v1293_v7  ;;  %327 = vperm.xlu1 %1046, %v1452_v4  }
  0x44   : > { %343 = vperm.xlu0 %1048, %v1452_v4   ;;  %1047 = vset.pattern.permute.xlu2 %v1293_v7  ;;  %v1109_v7 = vld [vmem:[%s1441_s8 + $0x7] ss:$0 sm:$0xff] }
  0x45   : > { %339 = vperm.xlu2 %1047, %v1447_v3  }
  0x4b   : > { %1049 = vset.pattern.permute.xlu1 %v1294_v8 }
  0x4c   : > { %1053 = vset.pattern.permute.xlu0 %v1295_v9  ;;  %355 = vperm.xlu1 %1049, %v1447_v3  }
  0x4d   : > { %387 = vperm.xlu0 %1053, %v1447_v3   ;;  %1050 = vset.pattern.permute.xlu2 %v1294_v8 }
  0x4e   : > { %359 = vperm.xlu2 %1050, %v1452_v4  }
  0x54   : > { %1051 = vset.pattern.permute.xlu1 %v1296_v10 }
  0x55   : > { %1058 = vset.pattern.permute.xlu0 %v1297_v11  ;;  %371 = vperm.xlu1 %1051, %v1447_v3  }
  0x56   : > { %423 = vperm.xlu0 %1058, %v1452_v4   ;;  %1052 = vset.pattern.permute.xlu2 %v1296_v10 }
  0x57   : > { %375 = vperm.xlu2 %1052, %v1452_v4  }
  0x5d   : > { %1054 = vset.pattern.permute.xlu1 %v1295_v9  ;;  %v1310_v9 = vmov 25  }
  0x5e   : > { %1063 = vset.pattern.permute.xlu0 %v1298_v12  ;;  %391 = vperm.xlu1 %1054, %v1452_v4  }
  0x5f   : > { %467 = vperm.xlu0 %1063, %v1447_v3   ;;  %1055 = vset.pattern.permute.xlu2 %v1299_v13 }
  0x60   : > { %403 = vperm.xlu2 %1055, %v1447_v3  }
  0x66   : > { %1056 = vset.pattern.permute.xlu1 %v1299_v13 }
  0x67   : > { %407 = vperm.xlu1 %1056, %v1452_v4   ;;  %1068 = vset.pattern.permute.xlu0 %v1300_v14 }
  0x68   : > { %1057 = vset.pattern.permute.xlu2 %v1297_v11  ;;  %503 = vperm.xlu0 %1068, %v1452_v4  }
  0x69   : > { %419 = vperm.xlu2 %1057, %v1447_v3  }
  0x6f   : > { %1059 = vset.pattern.permute.xlu1 %v1301_v15 }
  0x70   : > { %435 = vperm.xlu1 %1059, %v1447_v3   ;;  %1073 = vset.pattern.permute.xlu0 %v1303_v17 }
  0x71   : > { %1060 = vset.pattern.permute.xlu2 %v1301_v15  ;;  %547 = vperm.xlu0 %1073, %v1447_v3  }
  0x72   : > { %439 = vperm.xlu2 %1060, %v1452_v4  }
  0x78   : > { %1061 = vset.pattern.permute.xlu1 %v1302_v16 }
  0x79   : > { %451 = vperm.xlu1 %1061, %v1447_v3   ;;  %1078 = vset.pattern.permute.xlu0 %v1305_v21 }
  0x7a   : > { %1062 = vset.pattern.permute.xlu2 %v1302_v16  ;;  %583 = vperm.xlu0 %1078, %v1452_v4   ;;  %v1311_v16 = vmov 21  }
  0x7b   : > { %455 = vperm.xlu2 %1062, %v1452_v4  }
  0x81   : > { %1064 = vset.pattern.permute.xlu1 %v1298_v12 }
  0x82   : > { %471 = vperm.xlu1 %1064, %v1452_v4   ;;  %1083 = vset.pattern.permute.xlu0 %v1308_v39 }
  0x83   : > { %1065 = vset.pattern.permute.xlu2 %v1304_v18  ;;  %627 = vperm.xlu0 %1083, %v1447_v3  }
  0x84   : > { %483 = vperm.xlu2 %1065, %v1447_v3   ;;  %v292_v19 = vpop.permute.xlu2 %291 }
  0x85   : > { %v299_v29 = vsub.f32 %v292_v19, %v1102_v24 }
  0x87   : > { %v301_v35 = vand.u32 2147483647, %v299_v29  ;;  %v1312_v29 = vmov 22  }
  0x8a   : > { %1066 = vset.pattern.permute.xlu1 %v1304_v18 }
  0x8b   : > { %487 = vperm.xlu1 %1066, %v1452_v4   ;;  %1088 = vset.pattern.permute.xlu0 %v1310_v9 }
  0x8c   : > { %1067 = vset.pattern.permute.xlu2 %v1300_v14  ;;  %v296_v20 = vpop.permute.xlu2 %295  ;;  %663 = vperm.xlu0 %1088, %v1452_v4  }
  0x8d   : > { %499 = vperm.xlu2 %1067, %v1447_v3   ;;  %v300_v42 = vsub.f32 %v296_v20, %v1102_v24 }
  0x8f   : > { %v302_v48 = vand.u32 2147483647, %v300_v42 }
  0x93   : > { %1069 = vset.pattern.permute.xlu1 %v1306_v22 }
  0x94   : > { %515 = vperm.xlu1 %1069, %v1447_v3  }
  0x95   : > { %1070 = vset.pattern.permute.xlu2 %v1306_v22 }
  0x96   : > { %519 = vperm.xlu2 %1070, %v1452_v4   ;;  %v324_v23 = vpop.permute.xlu2 %323 }
  0x97   : > { %v331_v57 = vsub.f32 %v324_v23, %v1105_v50 }
  0x99   : > { %v333_v63 = vand.u32 2147483647, %v331_v57 }
  0x9b   : > { %v276_v27 = vpop.permute.xlu1 %275 }
  0x9c   : > { %v259_v28 = vpop.permute.xlu0 %258  ;;  %v283_v30 = vsub.f32 %v276_v27, %v1103_v25  ;;  %1071 = vset.pattern.permute.xlu1 %v1307_v32 }
  0x9d   : > { %v267_v31 = vsub.f32 %v259_v28, %v1104_v26  ;;  %531 = vperm.xlu1 %1071, %v1447_v3  }
  0x9e   : > { %v285_v33 = vand.u32 2147483647, %v283_v30  ;;  %1072 = vset.pattern.permute.xlu2 %v1307_v32 }
  0x9f   : > { %v269_v34 = vand.u32 2147483647, %v267_v31  ;;  %535 = vperm.xlu2 %1072, %v1452_v4   ;;  %v340_v37 = vpop.permute.xlu2 %339  ;;  %v1111_v31 = vld [vmem:[%s1441_s8 + $0x8] ss:$0 sm:$0xff] }
  0xa0   : > { %v347_v58 = vsub.f32 %v340_v37, %v1106_v51  ;;  %v1313_v37 = vmov 28  }
  0xa1   : > { %v287_v36 = vadd.f32 %v285_v33, %v269_v34  ;;  %v1110_v34 = vld [vmem:[%s1441_s8 + $0x9] ss:$0 sm:$0xff]  ;;  %1093 = vset.pattern.permute.xlu0 %v1313_v37 }
  0xa2   : > { %v349_v0 = vand.u32 2147483647, %v347_v58  ;;  %707 = vperm.xlu0 %1093, %v1447_v3   ;;  %v1113_v58 = vld [vmem:[%s1441_s8 + $0xb] ss:$0 sm:$0xff] }
  0xa3   : > { %v303_v38 = vadd.f32 %v301_v35, %v287_v36  ;;  %v280_v40 = vpop.permute.xlu1 %279  ;;  %v1112_v36 = vld [vmem:[%s1441_s8 + $0xa] ss:$0 sm:$0xff] }
  0xa4   : > { %v264_v41 = vpop.permute.xlu0 %263  ;;  %v284_v43 = vsub.f32 %v280_v40, %v1103_v25 }
  0xa5   : > { %v268_v44 = vsub.f32 %v264_v41, %v1104_v26  ;;  %1074 = vset.pattern.permute.xlu1 %v1303_v17 }
  0xa6   : > { %v286_v45 = vand.u32 2147483647, %v284_v43  ;;  %551 = vperm.xlu1 %1074, %v1452_v4  }
  0xa7   : > { %v270_v46 = vand.u32 2147483647, %v268_v44  ;;  %1075 = vset.pattern.permute.xlu2 %v1309_v47 }
  0xa8   : > { %563 = vperm.xlu2 %1075, %v1447_v3   ;;  %v360_v54 = vpop.permute.xlu2 %359 }
  0xa9   : > { %v288_v49 = vadd.f32 %v286_v45, %v270_v46  ;;  %v364_v13 = vsub.f32 %v360_v54, %v1108_v5  ;;  %v1314_v46 = vmov 24  }
  0xab   : > { %v304_v53 = vadd.f32 %v302_v48, %v288_v49  ;;  %v366_v20 = vand.u32 2147483647, %v364_v13  ;;  %v1317_v13 = vmov 31  }
  0xac   : > { %v312_v55 = vpop.permute.xlu1 %311 }
  0xad   : > { %v308_v56 = vpop.permute.xlu0 %307  ;;  %v316_v59 = vsub.f32 %v312_v55, %v1107_v52 }
  0xae   : > { %v315_v60 = vsub.f32 %v308_v56, %v1107_v52  ;;  %1076 = vset.pattern.permute.xlu1 %v1309_v47 }
  0xaf   : > { %v318_v61 = vand.u32 2147483647, %v316_v59  ;;  %567 = vperm.xlu1 %1076, %v1452_v4  }
  0xb0   : > { %v317_v62 = vand.u32 2147483647, %v315_v60  ;;  %1077 = vset.pattern.permute.xlu2 %v1305_v21  ;;  %v1114_v60 = vld [vmem:[%s1441_s8 + $0xc] ss:$0 sm:$0xff] }
  0xb1   : > { %v320_v1 = vadd.f32 %v318_v61, %v304_v53  ;;  %579 = vperm.xlu2 %1077, %v1447_v3   ;;  %v376_v8 = vpop.permute.xlu2 %375  ;;  %v1315_v61 = vmov 30  }
  0xb2   : > { %v319_v2 = vadd.f32 %v317_v62, %v303_v38  ;;  %v380_v19 = vsub.f32 %v376_v8, %v1109_v7  ;;  %1098 = vset.pattern.permute.xlu0 %v1315_v61 }
  0xb3   : > { %743 = vperm.xlu0 %1098, %v1452_v4  }
  0xb4   : > { %v335_v6 = vadd.f32 %v333_v63, %v319_v2  ;;  %v382_v23 = vand.u32 2147483647, %v380_v19  ;;  %v1316_v2 = vmov 26  }
  0xb5   : > { %v328_v10 = vpop.permute.xlu1 %327 }
  0xb6   : > { %v344_v11 = vpop.permute.xlu0 %343  ;;  %v351_v12 = vadd.f32 %v349_v0, %v335_v6  ;;  %v332_v14 = vsub.f32 %v328_v10, %v1105_v50 }
  0xb7   : > { %v348_v15 = vsub.f32 %v344_v11, %v1106_v51  ;;  %1079 = vset.pattern.permute.xlu1 %v1311_v16 }
  0xb8   : > { %v334_v17 = vand.u32 2147483647, %v332_v14  ;;  %595 = vperm.xlu1 %1079, %v1447_v3  }
  0xb9   : > { %v350_v18 = vand.u32 2147483647, %v348_v15  ;;  %1080 = vset.pattern.permute.xlu2 %v1311_v16 }
  0xba   : > { %v336_v21 = vadd.f32 %v334_v17, %v320_v1  ;;  %599 = vperm.xlu2 %1080, %v1452_v4   ;;  %v404_v24 = vpop.permute.xlu2 %403 }
  0xbb   : > { %v411_v41 = vsub.f32 %v404_v24, %v1110_v34  ;;  %1101 = vset.pattern.permute.xlu0 %v1317_v13 }
  0xbc   : > { %v352_v22 = vadd.f32 %v350_v18, %v336_v21  ;;  %v1318_v18 = vmov 27  }
  0xbd   : > { %v413_v47 = vand.u32 2147483647, %v411_v41 }
  0xbe   : > { %v368_v25 = vadd.f32 %v366_v20, %v352_v22  ;;  %v356_v26 = vpop.permute.xlu1 %355  ;;  %v1116_v20 = vld [vmem:[%s1441_s8 + $0xd] ss:$0 sm:$0xff] }
  0xbf   : > { %v363_v27 = vsub.f32 %v356_v26, %v1108_v5  ;;  %v388_v33 = vpop.permute.xlu0 %387 }
  0xc0   : > { %v384_v28 = vadd.f32 %v382_v23, %v368_v25  ;;  %1081 = vset.pattern.permute.xlu1 %v1312_v29  ;;  %v395_v35 = vsub.f32 %v388_v33, %v1111_v31  ;;  %v1115_v23 = vld [vmem:[%s1441_s8 + $0xe] ss:$0 sm:$0xff]  ;;  %v1117_v25 = vld [vmem:[%s1441_s8 + $0xf] ss:$0 sm:$0xff]  ;;  %v1319_v33 = vmov 29  }
  0xc1   : > { %v365_v30 = vand.u32 2147483647, %v363_v27  ;;  %611 = vperm.xlu1 %1081, %v1447_v3  }
  0xc2   : > { %1082 = vset.pattern.permute.xlu2 %v1312_v29  ;;  %v397_v44 = vand.u32 2147483647, %v395_v35 }
  0xc3   : > { %v367_v32 = vadd.f32 %v365_v30, %v351_v12  ;;  %615 = vperm.xlu2 %1082, %v1452_v4   ;;  %v420_v40 = vpop.permute.xlu2 %419 }
  0xc4   : > { %v427_v45 = vsub.f32 %v420_v40, %v1112_v36 }
  0xc6   : > { %v429_v50 = vand.u32 2147483647, %v427_v45 }
  0xc7   : > { %v372_v38 = vpop.permute.xlu1 %371 }
  0xc8   : > { %v379_v42 = vsub.f32 %v372_v38, %v1109_v7  ;;  %v424_v57 = vpop.permute.xlu0 %423 }
  0xc9   : > { %1084 = vset.pattern.permute.xlu1 %v1308_v39  ;;  %v428_v59 = vsub.f32 %v424_v57, %v1112_v36 }
  0xca   : > { %v381_v43 = vand.u32 2147483647, %v379_v42  ;;  %631 = vperm.xlu1 %1084, %v1452_v4  }
  0xcb   : > { %1085 = vset.pattern.permute.xlu2 %v1314_v46  ;;  %v430_v6 = vand.u32 2147483647, %v428_v59 }
  0xcc   : > { %v383_v48 = vadd.f32 %v381_v43, %v367_v32  ;;  %643 = vperm.xlu2 %1085, %v1447_v3   ;;  %v440_v51 = vpop.permute.xlu2 %439 }
  0xcd   : > { %v444_v0 = vsub.f32 %v440_v51, %v1113_v58 }
  0xce   : > { %v399_v49 = vadd.f32 %v397_v44, %v383_v48 }
  0xcf   : > { %v446_v8 = vand.u32 2147483647, %v444_v0 }
  0xd0   : > { %v415_v52 = vadd.f32 %v413_v47, %v399_v49  ;;  %v392_v53 = vpop.permute.xlu1 %391 }
  0xd1   : > { %v396_v54 = vsub.f32 %v392_v53, %v1111_v31  ;;  %v468_v22 = vpop.permute.xlu0 %467 }
  0xd2   : > { %v431_v39 = vadd.f32 %v429_v50, %v415_v52  ;;  %1086 = vset.pattern.permute.xlu1 %v1314_v46  ;;  %v475_v24 = vsub.f32 %v468_v22, %v1116_v20  ;;  %v1118_v46 = vld [vmem:[%s1441_s8 + $0x10] ss:$0 sm:$0xff] }
  0xd3   : > { %v398_v55 = vand.u32 2147483647, %v396_v54  ;;  %647 = vperm.xlu1 %1086, %v1452_v4  }
  0xd4   : > { %1087 = vset.pattern.permute.xlu2 %v1310_v9  ;;  %v477_v31 = vand.u32 2147483647, %v475_v24  ;;  %v1122_v24 = vld [vmem:[%s1441_s8 + $0x14] ss:$0 sm:$0xff] }
  0xd5   : > { %v400_v56 = vadd.f32 %v398_v55, %v384_v28  ;;  %659 = vperm.xlu2 %1087, %v1447_v3   ;;  %v456_v63 = vpop.permute.xlu2 %455 }
  0xd6   : > { %v460_v7 = vsub.f32 %v456_v63, %v1114_v60 }
  0xd8   : > { %v462_v11 = vand.u32 2147483647, %v460_v7 }
  0xd9   : > { %v408_v62 = vpop.permute.xlu1 %407 }
  0xda   : > { %v412_v1 = vsub.f32 %v408_v62, %v1110_v34  ;;  %v504_v45 = vpop.permute.xlu0 %503 }
  0xdb   : > { %1089 = vset.pattern.permute.xlu1 %v1316_v2  ;;  %v508_v48 = vsub.f32 %v504_v45, %v1117_v25 }
  0xdc   : > { %v414_v5 = vand.u32 2147483647, %v412_v1  ;;  %675 = vperm.xlu1 %1089, %v1447_v3  }
  0xdd   : > { %1090 = vset.pattern.permute.xlu2 %v1316_v2  ;;  %v510_v53 = vand.u32 2147483647, %v508_v48 }
  0xde   : > { %v416_v9 = vadd.f32 %v414_v5, %v400_v56  ;;  %679 = vperm.xlu2 %1090, %v1452_v4   ;;  %v484_v12 = vpop.permute.xlu2 %483 }
  0xdf   : > { %v491_v28 = vsub.f32 %v484_v12, %v1115_v23 }
  0xe0   : > { %v432_v10 = vadd.f32 %v430_v6, %v416_v9 }
  0xe1   : > { %v493_v34 = vand.u32 2147483647, %v491_v28 }
  0xe2   : > { %v448_v14 = vadd.f32 %v446_v8, %v432_v10  ;;  %v436_v15 = vpop.permute.xlu1 %435 }
  0xe3   : > { %v443_v16 = vsub.f32 %v436_v15, %v1113_v58  ;;  %v548_v10 = vpop.permute.xlu0 %547 }
  0xe4   : > { %v464_v17 = vadd.f32 %v462_v11, %v448_v14  ;;  %1091 = vset.pattern.permute.xlu1 %v1318_v18  ;;  %v1119_v11 = vld [vmem:[%s1441_s8 + $0x11] ss:$0 sm:$0xff] }
  0xe5   : > { %v445_v19 = vand.u32 2147483647, %v443_v16  ;;  %691 = vperm.xlu1 %1091, %v1447_v3   ;;  %v1120_v16 = vld [vmem:[%s1441_s8 + $0x13] ss:$0 sm:$0xff] }
  0xe6   : > { %1092 = vset.pattern.permute.xlu2 %v1318_v18 }
  0xe7   : > { %v447_v21 = vadd.f32 %v445_v19, %v431_v39  ;;  %695 = vperm.xlu2 %1092, %v1452_v4   ;;  %v500_v27 = vpop.permute.xlu2 %499 }
  0xe8   : > { %v507_v32 = vsub.f32 %v500_v27, %v1117_v25 }
  0xea   : > { %v509_v38 = vand.u32 2147483647, %v507_v32 }
  0xeb   : > { %v452_v26 = vpop.permute.xlu1 %451 }
  0xec   : > { %v459_v29 = vsub.f32 %v452_v26, %v1114_v60 }
  0xed   : > { %1094 = vset.pattern.permute.xlu1 %v1313_v37 }
  0xee   : > { %v461_v30 = vand.u32 2147483647, %v459_v29  ;;  %711 = vperm.xlu1 %1094, %v1452_v4  }
  0xef   : > { %1095 = vset.pattern.permute.xlu2 %v1319_v33 }
  0xf0   : > { %v463_v35 = vadd.f32 %v461_v30, %v447_v21  ;;  %723 = vperm.xlu2 %1095, %v1447_v3   ;;  %v520_v47 = vpop.permute.xlu2 %519  ;;  %v1123_v30 = vld [vmem:[%s1441_s8 + $0x15] ss:$0 sm:$0xff] }
  0xf1   : > { %v524_v50 = vsub.f32 %v520_v47, %v1118_v46 }
  0xf2   : > { %v479_v36 = vadd.f32 %v477_v31, %v463_v35 }
  0xf3   : > { %v526_v54 = vand.u32 2147483647, %v524_v50 }
  0xf4   : > { %v495_v40 = vadd.f32 %v493_v34, %v479_v36  ;;  %v472_v41 = vpop.permute.xlu1 %471 }
  0xf5   : > { %v476_v42 = vsub.f32 %v472_v41, %v1116_v20  ;;  %v584_v20 = vpop.permute.xlu0 %583 }
  0xf6   : > { %v511_v43 = vadd.f32 %v509_v38, %v495_v40  ;;  %1096 = vset.pattern.permute.xlu1 %v1319_v33  ;;  %v588_v32 = vsub.f32 %v584_v20, %v1122_v24 }
  0xf7   : > { %v478_v37 = vand.u32 2147483647, %v476_v42  ;;  %727 = vperm.xlu1 %1096, %v1452_v4  }
  0xf8   : > { %1097 = vset.pattern.permute.xlu2 %v1315_v61 }
  0xf9   : > { %v480_v44 = vadd.f32 %v478_v37, %v464_v17  ;;  %739 = vperm.xlu2 %1097, %v1447_v3   ;;  %v536_v56 = vpop.permute.xlu2 %535  ;;  %v1124_v37 = vld [vmem:[%s1441_s8 + $0x16] ss:$0 sm:$0xff] }
  0xfa   : > { %v540_v14 = vsub.f32 %v536_v56, %v1119_v11 }
  0xfc   : > { %v542_v22 = vand.u32 2147483647, %v540_v14 }
  0xfd   : > { %v488_v49 = vpop.permute.xlu1 %487  ;;  %v628_v38 = vpop.permute.xlu0 %627 }
  0xfe   : > { %v492_v51 = vsub.f32 %v488_v49, %v1115_v23  ;;  %v1126_v49 = vld [vmem:[%s1441_s8 + $0x17] ss:$0 sm:$0xff] }
  0xff   : > { %1099 = vset.pattern.permute.xlu1 %v1317_v13 }
 0x100   : > { %v494_v52 = vand.u32 2147483647, %v492_v51  ;;  %755 = vperm.xlu1 %1099, %v1447_v3  }
 0x101   : > { %1100 = vset.pattern.permute.xlu2 %v1317_v13  ;;  %v1121_v13 = vld [vmem:[%s1441_s8 + $0x12] ss:$0 sm:$0xff] }
 0x102   : > { %v496_v39 = vadd.f32 %v494_v52, %v480_v44  ;;  %759 = vperm.xlu2 %1100, %v1452_v4   ;;  %v564_v62 = vpop.permute.xlu2 %563  ;;  %v555_v19 = vsub.f32 %v548_v10, %v1121_v13 }
 0x103   : > { %v571_v26 = vsub.f32 %v564_v62, %v1120_v16 }
 0x104   : > { %v512_v55 = vadd.f32 %v510_v53, %v496_v39  ;;  %v557_v28 = vand.u32 2147483647, %v555_v19 }
 0x105   : > { %v573_v34 = vand.u32 2147483647, %v571_v26 }
 0x106   : > { %v528_v57 = vadd.f32 %v526_v54, %v512_v55  ;;  %v516_v58 = vpop.permute.xlu1 %515  ;;  %v1125_v54 = vld [vmem:[%s1441_s8 + $0x18] ss:$0 sm:$0xff] }
 0x107   : > { %v523_v59 = vsub.f32 %v516_v58, %v1118_v46  ;;  %v664_v58 = vpop.permute.xlu0 %663 }
 0x108   : > { %v544_v29 = vadd.f32 %v542_v22, %v528_v57  ;;  %v635_v57 = vsub.f32 %v628_v38, %v1126_v49 }
 0x109   : > { %v525_v60 = vand.u32 2147483647, %v523_v59 }
 0x10b   : > { %v527_v61 = vadd.f32 %v525_v60, %v511_v43  ;;  %v580_v0 = vpop.permute.xlu2 %579  ;;  %v590_v43 = vand.u32 2147483647, %v588_v32  ;;  %v1130_v32 = vld [vmem:[%s1441_s8 + $0x1d] ss:$0 sm:$0xff] }
 0x10c   : > { %v587_v36 = vsub.f32 %v580_v0, %v1122_v24 }
 0x10e   : > { %v589_v47 = vand.u32 2147483647, %v587_v36 }
 0x10f   : > { %v532_v63 = vpop.permute.xlu1 %531 }
 0x110   : > { %v539_v12 = vsub.f32 %v532_v63, %v1119_v11 }
 0x112   : > { %v541_v18 = vand.u32 2147483647, %v539_v12 }
 0x114   : > { %v600_v3 = vpop.permute.xlu2 %599  ;;  %v543_v27 = vadd.f32 %v541_v18, %v527_v61 }
 0x115   : > { %v604_v41 = vsub.f32 %v600_v3, %v1123_v30 }
 0x116   : > { %v559_v35 = vadd.f32 %v557_v28, %v543_v27  ;;  %v1131_v27 = vld [vmem:[%s1441_s8 + $0x1c] ss:$0 sm:$0xff] }
 0x117   : > { %v606_v50 = vand.u32 2147483647, %v604_v41  ;;  %v1132_v41 = vld [vmem:[%s1441_s8 + $0x1e] ss:$0 sm:$0xff] }
 0x118   : > { %v552_v1 = vpop.permute.xlu1 %551  ;;  %v575_v46 = vadd.f32 %v573_v34, %v559_v35 }
 0x119   : > { %v556_v17 = vsub.f32 %v552_v1, %v1121_v13  ;;  %v1127_v1 = vld [vmem:[%s1441_s8 + $0x19] ss:$0 sm:$0xff] }
 0x11a   : > { %v591_v55 = vadd.f32 %v589_v47, %v575_v46  ;;  %v668_v11 = vsub.f32 %v664_v58, %v1127_v1 }
 0x11b   : > { %v558_v25 = vand.u32 2147483647, %v556_v17  ;;  %v708_v17 = vpop.permute.xlu0 %707 }
 0x11c   : > { %v670_v20 = vand.u32 2147483647, %v668_v11  ;;  %v715_v34 = vsub.f32 %v708_v17, %v1131_v27 }
 0x11d   : > { %v616_v5 = vpop.permute.xlu2 %615  ;;  %v560_v33 = vadd.f32 %v558_v25, %v544_v29 }
 0x11e   : > { %v620_v52 = vsub.f32 %v616_v5, %v1124_v37 }
 0x120   : > { %v622_v61 = vand.u32 2147483647, %v620_v52 }
 0x121   : > { %v568_v2 = vpop.permute.xlu1 %567 }
 0x122   : > { %v572_v23 = vsub.f32 %v568_v2, %v1120_v16 }
 0x124   : > { %v574_v31 = vand.u32 2147483647, %v572_v23 }
 0x125   : > { %v744_v35 = vpop.permute.xlu0 %743 }
 0x126   : > { %v1538_v7 = vpop.permute.xlu2 %643  ;;  %v576_v42 = vadd.f32 %v574_v31, %v560_v33 }
 0x127   : > { %v651_v2 = vsub.f32 %v1538_v7, %v1125_v54 }
 0x128   : > { %v592_v51 = vadd.f32 %v590_v43, %v576_v42  ;;  %v1133_v42 = vld [vmem:[%s1441_s8 + $0x1f] ss:$0 sm:$0xff] }
 0x129   : > { %v653_v13 = vand.u32 2147483647, %v651_v2 }
 0x12a   : > { %v596_v6 = vpop.permute.xlu1 %595  ;;  %v608_v60 = vadd.f32 %v606_v50, %v592_v51 }
 0x12b   : > { %v603_v45 = vsub.f32 %v596_v6, %v1123_v30  ;;  %v637_v6 = vand.u32 2147483647, %v635_v57 }
 0x12d   : > { %v605_v53 = vand.u32 2147483647, %v603_v45  ;;  %v748_v45 = vsub.f32 %v744_v35, %v1132_v41 }
 0x12f   : > { %v1540_v8 = vpop.permute.xlu2 %659  ;;  %v607_v63 = vadd.f32 %v605_v53, %v591_v55 }
 0x130   : > { %v667_v16 = vsub.f32 %v1540_v8, %v1127_v1 }
 0x132   : > { %v669_v25 = vand.u32 2147483647, %v667_v16 }
 0x133   : > { %v612_v4 = vpop.permute.xlu1 %611 }
 0x134   : > { %v619_v48 = vsub.f32 %v612_v4, %v1124_v37  ;;  %v624_v4 = vadd.f32 %v622_v61, %v608_v60 }
 0x136   : > { %v621_v56 = vand.u32 2147483647, %v619_v48  ;;  %v717_v48 = vand.u32 2147483647, %v715_v34 }
 0x138   : > { %v1544_v15 = vpop.permute.xlu2 %679  ;;  %v623_v5 = vadd.f32 %v621_v56, %v607_v63 }
 0x13a   : > { %v639_v14 = vadd.f32 %v637_v6, %v623_v5 }
 0x13c   : > { %v632_v9 = vpop.permute.xlu1 %631  ;;  %v655_v24 = vadd.f32 %v653_v13, %v639_v14 }
 0x13d   : > { %v636_v39 = vsub.f32 %v632_v9, %v1126_v49  ;;  %v1128_v9 = vld [vmem:[%s1441_s8 + $0x1a] ss:$0 sm:$0xff] }
 0x13e   : > { %v684_v18 = vsub.f32 %v1544_v15, %v1128_v9  ;;  %v671_v15 = vadd.f32 %v669_v25, %v655_v24 }
 0x13f   : > { %v638_v3 = vand.u32 2147483647, %v636_v39 }
 0x140   : > { %v686_v28 = vand.u32 2147483647, %v684_v18 }
 0x141   : > { %v1549_v40 = vpop.permute.xlu2 %695  ;;  %v640_v12 = vadd.f32 %v638_v3, %v624_v4 }
 0x145   : > { %v648_v21 = vpop.permute.xlu1 %647 }
 0x146   : > { %v652_v62 = vsub.f32 %v648_v21, %v1125_v54  ;;  %v1129_v21 = vld [vmem:[%s1441_s8 + $0x1b] ss:$0 sm:$0xff]  ;;  %v750_v54 = vand.u32 2147483647, %v748_v45 }
 0x147   : > { %v700_v8 = vsub.f32 %v1549_v40, %v1129_v21 }
 0x148   : > { %v654_v10 = vand.u32 2147483647, %v652_v62 }
 0x149   : > { %v702_v38 = vand.u32 2147483647, %v700_v8 }
 0x14a   : > { %v724_v59 = vpop.permute.xlu2 %723  ;;  %v656_v19 = vadd.f32 %v654_v10, %v640_v12 }
 0x14b   : > { %v731_v46 = vsub.f32 %v724_v59, %v1130_v32 }
 0x14c   : > { %v672_v29 = vadd.f32 %v670_v20, %v656_v19 }
 0x14d   : > { %v733_v39 = vand.u32 2147483647, %v731_v46 }
 0x14e   : > { %v676_v44 = vpop.permute.xlu1 %675  ;;  %v688_v36 = vadd.f32 %v686_v28, %v672_v29 }
 0x14f   : > { %v683_v7 = vsub.f32 %v676_v44, %v1128_v9 }
 0x150   : > { %v704_v40 = vadd.f32 %v702_v38, %v688_v36 }
 0x151   : > { %v685_v30 = vand.u32 2147483647, %v683_v7 }
 0x153   : > { %v740_v22 = vpop.permute.xlu2 %739  ;;  %v687_v43 = vadd.f32 %v685_v30, %v671_v15 }
 0x154   : > { %v747_v56 = vsub.f32 %v740_v22, %v1132_v41 }
 0x156   : > { %v749_v62 = vand.u32 2147483647, %v747_v56 }
 0x157   : > { %v692_v0 = vpop.permute.xlu1 %691 }
 0x158   : > { %v699_v26 = vsub.f32 %v692_v0, %v1129_v21 }
 0x15a   : > { %v701_v33 = vand.u32 2147483647, %v699_v26 }
 0x15c   : > { %v760_v37 = vpop.permute.xlu2 %759  ;;  %v703_v47 = vadd.f32 %v701_v33, %v687_v43 }
 0x15d   : > { %v764_v51 = vsub.f32 %v760_v37, %v1133_v42 }
 0x15e   : > { %v719_v55 = vadd.f32 %v717_v48, %v703_v47 }
 0x15f   : > { %v766_v58 = vand.u32 2147483647, %v764_v51 }
 0x160   : > { %v712_v23 = vpop.permute.xlu1 %711  ;;  %v735_v61 = vadd.f32 %v733_v39, %v719_v55 }
 0x161   : > { %v716_v31 = vsub.f32 %v712_v23, %v1131_v27 }
 0x162   : > { %v751_v3 = vadd.f32 %v749_v62, %v735_v61 }
 0x163   : > { %v718_v44 = vand.u32 2147483647, %v716_v31 }
 0x165   : > { %v720_v52 = vadd.f32 %v718_v44, %v704_v40 }
 0x169   : > { %v728_v49 = vpop.permute.xlu1 %727 }
 0x16a   : > { %v732_v50 = vsub.f32 %v728_v49, %v1130_v32 }
 0x16c   : > { %v734_v53 = vand.u32 2147483647, %v732_v50 }
 0x16e   : > { %v736_v57 = vadd.f32 %v734_v53, %v720_v52 }
 0x170   : > { %v752_v60 = vadd.f32 %v750_v54, %v736_v57 }
 0x172   : > { %v768_v59 = vadd.f32 %v766_v58, %v752_v60  ;;  %v756_v63 = vpop.permute.xlu1 %755 }
 0x173   : > { %v763_v0 = vsub.f32 %v756_v63, %v1133_v42 }
 0x174   : > { %v770_v1 = vmul.f32 -0.5, %v768_v59 }
 0x175   : > { %v765_v2 = vand.u32 2147483647, %v763_v0 }
 0x176   : > { %v773_v5 = vmul.f32 1.442695, %v770_v1 }
 0x177   : > { %v767_v6 = vadd.f32 %v765_v2, %v751_v3 }
 0x178   : > { %1134 = vpow2.f32 %v773_v5 }
 0x179   : > { %v769_v4 = vmul.f32 -0.5, %v767_v6 }
 0x17b   : > { %v771_v9 = vmul.f32 1.442695, %v769_v4 }
 0x17d   : > { %1136 = vpow2.f32 %v771_v9 }
 0x17e   : > { %v1135_v10 = vpop.eup %1134 }
 0x17f   : > { %776 = vst [vmem:[%s249_s20 + $0x8] sm:$0xff] %v1135_v10 }
 0x183   : > { %v1137_v11 = vpop.eup %1136 }
 0x184   : > { %775 = vst [vmem:[%s249_s20] sm:$0xff] %v1137_v11 }
 0x185   : > { %1225 = shalt.err (!%p1222_p13)
}
 0x186   : > { %s1320_s3 = smov 128   ;;  %s1321_s25 = smov 8  }
 0x187   : > { %941 = dma.vmem_to_hbm [thread:$0]  (%p1388_p9), %s794_s26, 256, %s796_s19, %s778_s27, %s1320_s3, %s1320_s3, %s1321_s25  }
 0x188 PF: > { %s810_s6 = sand.u32 1, %s1264_s9   ;;  %p951_p0 = pnand %p918_p12, %p1395_p11 }
 0x189   : > { %s811_s8 = scalar_lea.sflag [#allocation5], %s810_s6 }
 0x18a   : > { %p952_p1 = pneg %p951_p0 }
 0x18c   : > { %1259 = dma.done.wait (%p952_p1), %s811_s8, 256  }
 0x18d   : > { %1261 = vsyncadd (%p952_p1), %s811_s8, 4294967040  ;;  %s21_s14 = sadd.s32 1, %s1284_s14   ;;  %s1613_s9 = smov %s1268_s10 }
 0x18e   : > { %p18_p2 = scmp.ge.s32.totalorder %s21_s14, 4   ;;  %s1614_s10 = smov %s1272_s11 }
 0x18f   : > { %s1615_s11 = smov %s1393_s23  ;;  %s1616_s12 = smov %s1280_s13 }
 0x190   : > { %s1617_s13 = smov %s1619_s17  ;;  %20 = sbr.rel (!%p18_p2) target bundleno = 8 (0x8), region = 86 }
 0x195   :  { %817 = vsyncpa [#allocation4], 1 }
 0x196   :  { %819 = vsyncpa [#allocation4 + $0x1], 1 }
 0x197   :  { %820 = vsyncpa [#allocation7], 1 }
 0x198   :  { %822 = vsyncpa [#allocation7 + $0x1], 1 }
 0x199   :  { %823 = vsyncpa [#allocation5], 1 }
 0x19a   :  { %825 = vsyncpa [#allocation5 + $0x1], 1 }

</bundles_post_ra>
